<compile_context>
chip_gen: v6e
topology: v6e:2x2x1
jax: 0.10.0
libtpu: 0.0.40
codegen_flags: <defaults>
</compile_context>

<pallas_src>
import jax
import jax.numpy as jnp
from jax.experimental import pallas as pl
from jax.experimental.pallas import tpu as pltpu


# --------------------------------------------------------------------------- #
# XLA glue: ImageNet normalization + AvgPool2d(2) subsampling                  #
# --------------------------------------------------------------------------- #

IMAGENET_MEAN = jnp.array([0.485, 0.456, 0.406], jnp.float32).reshape(1, 3, 1, 1)
IMAGENET_STD = jnp.array([0.229, 0.224, 0.225], jnp.float32).reshape(1, 3, 1, 1)
IMAGENET_STD2 = (0.229 ** 2, 0.224 ** 2, 0.225 ** 2)


def normalize(x):
    return (x - IMAGENET_MEAN) / IMAGENET_STD


def subsample(x):
    # AvgPool2d(kernel_size=2, stride=2)
    B, C, H, W = x.shape
    return x.reshape(B, C, H // 2, 2, W // 2, 2).mean(axis=(3, 5))


# --------------------------------------------------------------------------- #
# Fused Pallas kernel: conv3x3+ReLU -> content SSD, Grams -> style SSD, TV    #
# --------------------------------------------------------------------------- #

def _make_fused_kernel(C, G, TH, W, F, gram_norm):
    THp, Wp = TH + 2, W + 2
    L = THp * Wp                       # per-group flattened padded tile length
    NOUT = (TH - 1) * Wp + W           # lane extent covering one group's valid outputs
    NTOT = (G - 1) * L + NOUT          # lane extent of the merged all-group matmul

    def kernel(x_ref, w_ref, b_ref, m_ref, tvw_ref, o_ref,
               gn_ref, gs_ref, c_ref, tv_ref):
        t = pl.program_id(1)
        nt = pl.num_programs(1)

        @pl.when(t == 0)
        def _init():
            gn_ref[...] = jnp.zeros_like(gn_ref)
            gs_ref[...] = jnp.zeros_like(gs_ref)
            c_ref[...] = jnp.zeros_like(c_ref)
            tv_ref[...] = jnp.zeros_like(tv_ref)

        x = x_ref[0, 0]                       # (C, G*L) f32: [noise | content | style]
        xb = x.astype(jnp.bfloat16)           # bf16 MXU operand
        w = w_ref[...]                        # (9, F, C) bf16, tap = kh*3 + kw
        mask = m_ref[...]                     # (1, NOUT) f32 valid-output lanes

        # 3x3 'same' conv + ReLU: nine shifted lane-views of the resident tile,
        # each ONE 2-D MXU matmul over all three images at once (lane-dense N).
        # TODO(synk): at very large W the shifted slices could use pltpu.roll
        # (XLU slot) instead of relayout copies.
        feat = jnp.zeros((F, NTOT), jnp.float32)
        for kh in range(3):
            for kw in range(3):
                s = kh * Wp + kw
                feat = feat + jnp.dot(w[kh * 3 + kw], xb[:, s:s + NTOT],
                                      preferred_element_type=jnp.float32)
        feat = jnp.maximum(feat + b_ref[...], 0.0)

        # Per-group feature views; garbage (padding-centered) lanes zeroed.
        fn = feat[:, 0:NOUT] * mask                    # noise
        fc = feat[:, L:L + NOUT] * mask                # content
        fs = feat[:, 2 * L:2 * L + NOUT] * mask        # style

        # Content: partial sum of squared feature differences.
        dc = fn - fc
        c_ref[...] += jnp.sum(dc * dc, keepdims=True)

        # Gram accumulators (contract over spatial lanes, bf16 MXU, f32 acc).
        fnb = fn.astype(jnp.bfloat16)
        fsb = fs.astype(jnp.bfloat16)
        gn_ref[...] += jax.lax.dot_general(
            fnb, fnb, (((1,), (1,)), ((), ())),
            preferred_element_type=jnp.float32)
        gs_ref[...] += jax.lax.dot_general(
            fsb, fsb, (((1,), (1,)), ((), ())),
            preferred_element_type=jnp.float32)

        # Total variation of the (un-normalized) subsampled noise image:
        # per-channel std^2 is folded into the tvw weights, so diffs of the
        # resident *normalized* tile reproduce the raw-pixel TV exactly.
        xn = x[:, 0:L]                                 # noise group, f32
        d1 = xn[:, 1:L] - xn[:, 0:L - 1]               # horizontal neighbor diffs
        dv = xn[:, Wp:L] - xn[:, 0:L - Wp]             # vertical neighbor diffs
        tvw = tvw_ref[...]                             # (3, C, L) f32
        tv_part = (jnp.sum(tvw[0, :, 0:L - 1] * d1 * d1, keepdims=True)
                   + jnp.sum(tvw[1, :, 0:L - Wp] * dv * dv, keepdims=True)
                   + jnp.where(t > 0,
                               jnp.sum(tvw[2, :, 0:L - Wp] * dv * dv,
                                       keepdims=True),
                               jnp.zeros((1, 1), jnp.float32)))
        tv_ref[...] += tv_part

        # Finalize: style SSD from the accumulated Grams; pack the three
        # partial losses into one lane-dense (8, 128) store.
        @pl.when(t == nt - 1)
        def _finalize():
            dg = (gn_ref[...] - gs_ref[...]) * gram_norm
            style = jnp.sum(dg * dg)
            content = jnp.sum(c_ref[...])
            tv = jnp.sum(tv_ref[...])
            lane = jax.lax.broadcasted_iota(jnp.int32, o_ref.shape, 2)
            o_ref[...] = (jnp.where(lane == 0, content, 0.0)
                          + jnp.where(lane == 1, style, 0.0)
                          + jnp.where(lane == 2, tv, 0.0))

    return kernel


def fused_style_forward(noise_n, content_n, style_n, weight_taps, bias_col,
                        row_tile=None):
    """Single pallas_call computing per-batch-entry partial losses.

    Args:
      noise_n/content_n/style_n: normalized, subsampled images (B, C, H, W) f32.
      weight_taps: (9, F, C) bf16 conv weights, tap index = kh*3 + kw.
      bias_col:    (F, 1) f32 conv bias.
      row_tile:    feature-map rows per grid step (None -> full H).

    Returns (content_ssd, style_ssd, tv_ssd), each shape (B,) f32 raw sums.
    """
    B, C, H, W = noise_n.shape
    assert C == 3, "ImageNet normalizer assumes RGB input"
    F = weight_taps.shape[1]
    G = 3

    th = H if not row_tile else int(row_tile)
    if H % th != 0:
        th = H
    nt = H // th
    thp, wp = th + 2, W + 2
    L = thp * wp
    nout = (th - 1) * wp + W
    gram_norm = 1.0 / float(F * H * W)

    # ---- XLA glue: stack groups, zero-pad spatially, cut row tiles with a
    # one-row halo, flatten row-major (groups concatenated in the lane dim). --
    stacked = jnp.stack([noise_n, content_n, style_n], axis=2)     # (B, C, G, H, W)
    xp = jnp.pad(stacked, ((0, 0), (0, 0), (0, 0), (1, 1), (1, 1)))
    tiles = jnp.stack([xp[:, :, :, t * th:t * th + thp, :] for t in range(nt)],
                      axis=1)                                      # (B, NT, C, G, THp, Wp)
    x_flat = tiles.reshape(B, nt, C, G * L)

    # Valid-output lane mask for one group's base positions p = r*Wp + w.
    p = jnp.arange(nout, dtype=jnp.int32)
    prow, pcol = p // wp, p % wp
    conv_mask = ((prow < th) & (pcol < W)).astype(jnp.float32).reshape(1, nout)

    # TV pair-weight masks with per-channel std^2 folded in:
    #   [0] horizontal pairs, [1] in-tile vertical pairs, [2] top-halo pair.
    q = jnp.arange(L, dtype=jnp.int32)
    qrow, qcol = q // wp, q % wp
    mh = (qrow >= 1) & (qrow <= th) & (qcol >= 1) & (qcol <= W - 1)
    mvm = (qrow >= 1) & (qrow <= th - 1) & (qcol >= 1) & (qcol <= W)
    mvt = (qrow == 0) & (qcol >= 1) & (qcol <= W)
    std2 = jnp.array(IMAGENET_STD2, jnp.float32).reshape(C, 1)
    tvw = jnp.stack([std2 * mh.astype(jnp.float32)[None, :],
                     std2 * mvm.astype(jnp.float32)[None, :],
                     std2 * mvt.astype(jnp.float32)[None, :]], axis=0)  # (3, C, L)

    block_bytes = (C * G * L * 4 + 9 * F * C * 2 + F * 4 + nout * 4
                   + 3 * C * L * 4 + 8 * 128 * 4)
    vmem_limit = int(min(48 * 1024 * 1024, max(16 * 1024 * 1024, 8 * block_bytes)))

    out = pl.pallas_call(
        _make_fused_kernel(C, G, th, W, F, gram_norm),
        out_shape=jax.ShapeDtypeStruct((B, 8, 128), jnp.float32),
        grid=(B, nt),
        in_specs=[
            pl.BlockSpec((1, 1, C, G * L), lambda b, t: (b, t, 0, 0)),
            pl.BlockSpec((9, F, C), lambda b, t: (0, 0, 0)),
            pl.BlockSpec((F, 1), lambda b, t: (0, 0)),
            pl.BlockSpec((1, nout), lambda b, t: (0, 0)),
            pl.BlockSpec((3, C, L), lambda b, t: (0, 0, 0)),
        ],
        out_specs=pl.BlockSpec((1, 8, 128), lambda b, t: (b, 0, 0)),
        scratch_shapes=[
            pltpu.VMEM((F, F), jnp.float32),      # Gram(noise) accumulator
            pltpu.VMEM((F, F), jnp.float32),      # Gram(style) accumulator
            pltpu.VMEM((1, 1), jnp.float32),      # content SSD accumulator
            pltpu.VMEM((1, 1), jnp.float32),      # TV accumulator
        ],
        compiler_params=pltpu.CompilerParams(
            dimension_semantics=("parallel", "arbitrary"),
            vmem_limit_bytes=vmem_limit),
    )(x_flat, weight_taps, bias_col, conv_mask, tvw)

    return out[:, 0, 0], out[:, 0, 1], out[:, 0, 2]


# --------------------------------------------------------------------------- #
# Feature layer (parameters only; execution is fused into the kernel)         #
# --------------------------------------------------------------------------- #

class FeatureLayer:
    """Truncated-VGG stand-in: 3x3 'same' conv (C->F) + ReLU.

    Holds parameters only; the conv runs inside the fused Pallas kernel (bf16
    MXU operands, f32 accumulation), so features never round-trip through HBM.
    """

    def __init__(self, weight, bias):
        F, C, KH, KW = weight.shape
        assert (KH, KW) == (3, 3)
        self.out_features = F
        self.in_channels = C
        # (9, F, C) bf16, tap index = kh*3 + kw.
        self.weight_taps = (jnp.asarray(weight, jnp.float32)
                            .transpose(2, 3, 0, 1)
                            .reshape(KH * KW, F, C)
                            .astype(jnp.bfloat16))
        self.bias_col = jnp.asarray(bias, jnp.float32).reshape(F, 1)


# --------------------------------------------------------------------------- #
# Losses / regularizers                                                       #
# --------------------------------------------------------------------------- #

class ContentLoss:
    """MSE of noise vs. content features; computed inside the fused kernel."""
    name = "content"


class GramStyleLoss:
    """MSE of (1/(F*HW))-normalized Gram matrices; computed inside the fused kernel."""
    # TODO(synk): Gram normalization kept from the prior implementation; the
    # reference GramStyleLoss normalization constant is not available to verify.
    name = "gram_style"


class TVLoss:
    """Total variation (sum of squared neighbor diffs); fused into the kernel."""
    name = "tv"

    def __call__(self, img):                           # plain-jnp fallback (unused)
        dh = img[:, :, 1:, :] - img[:, :, :-1, :]
        dw = img[:, :, :, 1:] - img[:, :, :, :-1]
        return jnp.sum(dh * dh) + jnp.sum(dw * dw)


def image_norm(img):
    """ImageNorm: mean squared pixel. Only evaluated when lambda_norm != 0."""
    return jnp.mean(img.astype(jnp.float32) ** 2)


# --------------------------------------------------------------------------- #
# StyleImageVisualizer (forward only; the Adam/TensorBoard `run` loop is      #
# host-side training-harness code, not part of the kernelized forward pass)   #
# --------------------------------------------------------------------------- #

class StyleImageVisualizer:

    def __init__(self, model, losses, transforms=(), batch_size=4, row_tile=None):
        self.model_name, self.subsampler, self.feature_layer = model
        self.image_loss = image_norm
        self.tot_var = TVLoss()                        # fused; kept for interface parity
        self.losses = losses
        self.normalizer = normalize
        self.transforms = transforms
        self.init_tv = 1e-05
        self.lambda_tv = self.init_tv
        self.lambda_norm = 0
        self.batch_size = batch_size
        self.row_tile = row_tile

    @property
    def name(self):
        return ':'.join([
            self.model_name,
            '+'.join([loss.name for loss in self.losses]),
            str(self.batch_size), str(self.init_tv), str(self.lambda_norm),
        ])

    def forward(self, noise_image, content_img, style_img, debug=False):
        noise_image = self.subsampler(noise_image)
        content_img = self.subsampler(content_img)
        style_img = self.subsampler(style_img)

        fl = self.feature_layer
        B, C, H, W = noise_image.shape
        HW, F = H * W, fl.out_features

        # Normalization is cheap XLA glue; everything downstream (conv+ReLU,
        # content SSD, Grams, style SSD, TV) runs in ONE fused Pallas kernel
        # with all intermediates resident in VMEM.
        content_ssd, style_ssd, tv_ssd = fused_style_forward(
            self.normalizer(noise_image),
            self.normalizer(content_img),
            self.normalizer(style_img),
            fl.weight_taps, fl.bias_col, row_tile=self.row_tile)

        available = {
            "content": jnp.sum(content_ssd) / float(B * HW * F),
            "gram_style": jnp.sum(style_ssd) / float(B * F * F),
        }
        losses = {loss.name: available[loss.name] for loss in self.losses}

        # TODO(synk): TV is the raw squared-difference sum; the reference
        # TVLoss normalization is not available (same convention as before).
        regularization = self.lambda_tv * jnp.sum(tv_ssd)
        if self.lambda_norm:   # lambda_norm == 0 -> skip the dead ImageNorm pass
            regularization = regularization + self.lambda_norm * self.image_loss(noise_image)

        if debug:
            print('loss : ', sum(losses.values()), 'reg : ', regularization)

        losses['regularization'] = regularization
        return losses


# --------------------------------------------------------------------------- #
# Main                                                                        #
# --------------------------------------------------------------------------- #

if __name__ == "__main__":
    key = jax.random.PRNGKey(0)
    k_w, k_b, k_n, k_c, k_s = jax.random.split(key, 5)

    C_IN, F_OUT = 3, 8
    B, H0, W0 = 2, 16, 16

    # deterministic synthetic feature-layer parameters (no checkpoint load)
    weight = jax.random.normal(k_w, (F_OUT, C_IN, 3, 3), jnp.float32) * 0.1
    bias = jax.random.normal(k_b, (F_OUT,), jnp.float32) * 0.01

    feature_layer = FeatureLayer(weight, bias)
    model = ("toy_vgg_block", subsample, feature_layer)

    # 16x16 inputs -> 8x8 feature map; row_tile=4 -> 2 row tiles per entry,
    # exercising the Gram/content/TV accumulator path across grid steps.
    visualizer = StyleImageVisualizer(
        model, losses=[ContentLoss(), GramStyleLoss()], batch_size=2, row_tile=4)

    noise = jax.random.uniform(k_n, (B, C_IN, H0, W0), jnp.float32)
    content = jax.random.uniform(k_c, (B, C_IN, H0, W0), jnp.float32)
    style = jax.random.uniform(k_s, (B, C_IN, H0, W0), jnp.float32)

    fwd = jax.jit(visualizer.forward)
    losses = fwd(noise, content, style)
    for v in losses.values():
        jax.block_until_ready(v)

    print("KERNEL_OK")
</pallas_src>

<mosaic_0001>
module attributes {stable_mosaic.version = 11 : i64} {
  func.func @kernel(%arg0: i32, %arg1: i32, %arg2: memref<1x1x3x180xf32, #tpu.memory_space<vmem>>, %arg3: memref<9x8x3xbf16, #tpu.memory_space<vmem>>, %arg4: memref<8x1xf32, #tpu.memory_space<vmem>>, %arg5: memref<1x38xf32, #tpu.memory_space<vmem>>, %arg6: memref<3x3x60xf32, #tpu.memory_space<vmem>>, %arg7: memref<1x8x128xf32, #tpu.memory_space<vmem>>, %arg8: memref<8x8xf32, #tpu.memory_space<vmem>>, %arg9: memref<8x8xf32, #tpu.memory_space<vmem>>, %arg10: memref<1x1xf32, #tpu.memory_space<vmem>>, %arg11: memref<1x1xf32, #tpu.memory_space<vmem>>) attributes {dimension_semantics = [#tpu.dimension_semantics<parallel>, #tpu.dimension_semantics<arbitrary>], iteration_bounds = array<i64: 2, 2>, scalar_prefetch = 0 : i64, scratch_operands = 4 : i64, tpu.core_type = #tpu.core_type<tc>, window_params = [{transform_indices = @transform_0, window_bounds = array<i64: 1, 1, 3, 180>}, {pipeline_mode = #tpu.pipeline_mode<synchronous>, transform_indices = @transform_1, window_bounds = array<i64: 9, 8, 3>}, {pipeline_mode = #tpu.pipeline_mode<synchronous>, transform_indices = @transform_2, window_bounds = array<i64: 8, 1>}, {pipeline_mode = #tpu.pipeline_mode<synchronous>, transform_indices = @transform_3, window_bounds = array<i64: 1, 38>}, {pipeline_mode = #tpu.pipeline_mode<synchronous>, transform_indices = @transform_4, window_bounds = array<i64: 3, 3, 60>}, {transform_indices = @transform_5, window_bounds = array<i64: 1, 8, 128>}]} {
    %c0_i32 = arith.constant 0 : i32
    %0 = arith.cmpi eq, %arg1, %c0_i32 : i32
    %1 = arith.extui %0 : i1 to i32
    %c0_i32_0 = arith.constant 0 : i32
    %2 = arith.cmpi ne, %1, %c0_i32_0 : i32
    scf.if %2 {
      %cst_49 = arith.constant 0.000000e+00 : f32
      %134 = vector.broadcast %cst_49 : f32 to vector<8x8xf32>
      %c0_50 = arith.constant 0 : index
      %c0_51 = arith.constant 0 : index
      %135 = vector.load %arg8[%c0_50, %c0_51] : memref<8x8xf32, #tpu.memory_space<vmem>>, vector<8x8xf32>
      tpu.vector_store %arg8[%c0_50, %c0_51], %134 {strides = array<i32>} : memref<8x8xf32, #tpu.memory_space<vmem>>, vector<8x8xf32>,
      %cst_52 = arith.constant 0.000000e+00 : f32
      %136 = vector.broadcast %cst_52 : f32 to vector<8x8xf32>
      %c0_53 = arith.constant 0 : index
      %c0_54 = arith.constant 0 : index
      %137 = vector.load %arg9[%c0_53, %c0_54] : memref<8x8xf32, #tpu.memory_space<vmem>>, vector<8x8xf32>
      tpu.vector_store %arg9[%c0_53, %c0_54], %136 {strides = array<i32>} : memref<8x8xf32, #tpu.memory_space<vmem>>, vector<8x8xf32>,
      %cst_55 = arith.constant 0.000000e+00 : f32
      %138 = vector.broadcast %cst_55 : f32 to vector<1x1xf32>
      %c0_56 = arith.constant 0 : index
      %c0_57 = arith.constant 0 : index
      %139 = vector.load %arg10[%c0_56, %c0_57] : memref<1x1xf32, #tpu.memory_space<vmem>>, vector<1x1xf32>
      tpu.vector_store %arg10[%c0_56, %c0_57], %138 {strides = array<i32>} : memref<1x1xf32, #tpu.memory_space<vmem>>, vector<1x1xf32>,
      %cst_58 = arith.constant 0.000000e+00 : f32
      %140 = vector.broadcast %cst_58 : f32 to vector<1x1xf32>
      %c0_59 = arith.constant 0 : index
      %c0_60 = arith.constant 0 : index
      %141 = vector.load %arg11[%c0_59, %c0_60] : memref<1x1xf32, #tpu.memory_space<vmem>>, vector<1x1xf32>
      tpu.vector_store %arg11[%c0_59, %c0_60], %140 {strides = array<i32>} : memref<1x1xf32, #tpu.memory_space<vmem>>, vector<1x1xf32>,
    } else {
    }
    %c0 = arith.constant 0 : index
    %c0_1 = arith.constant 0 : index
    %c0_2 = arith.constant 0 : index
    %c0_3 = arith.constant 0 : index
    %3 = vector.load %arg2[%c0, %c0_1, %c0_2, %c0_3] : memref<1x1x3x180xf32, #tpu.memory_space<vmem>>, vector<1x1x3x180xf32>
    %4 = vector.shape_cast %3 : vector<1x1x3x180xf32> to vector<3x180xf32>
    %5 = arith.truncf %4 : vector<3x180xf32> to vector<3x180xbf16>
    %c0_4 = arith.constant 0 : index
    %c0_5 = arith.constant 0 : index
    %c0_6 = arith.constant 0 : index
    %6 = vector.load %arg3[%c0_4, %c0_5, %c0_6] : memref<9x8x3xbf16, #tpu.memory_space<vmem>>, vector<9x8x3xbf16>
    %c0_7 = arith.constant 0 : index
    %c0_8 = arith.constant 0 : index
    %7 = vector.load %arg5[%c0_7, %c0_8] : memref<1x38xf32, #tpu.memory_space<vmem>>, vector<1x38xf32>
    %cst = arith.constant 0.000000e+00 : f32
    %8 = vector.broadcast %cst : f32 to vector<8x158xf32>
    %9 = vector.extract_strided_slice %6 {offsets = [0, 0, 0], sizes = [1, 8, 3], strides = [1, 1, 1]} : vector<9x8x3xbf16> to vector<1x8x3xbf16>
    %10 = vector.shape_cast %9 : vector<1x8x3xbf16> to vector<8x3xbf16>
    %11 = vector.extract_strided_slice %5 {offsets = [0, 0], sizes = [3, 158], strides = [1, 1]} : vector<3x180xbf16> to vector<3x158xbf16>
    %cst_9 = arith.constant dense<0.000000e+00> : vector<8x158xf32>
    %12 = tpu.matmul %10, %11, %cst_9 {dimension_numbers = #tpu.dot_dimension_numbers<[1], [0], [0], [1], [0, 0, 1, 1], [], []>} : vector<8x3xbf16>, vector<3x158xbf16>, vector<8x158xf32> -> vector<8x158xf32>
    %13 = arith.addf %8, %12 : vector<8x158xf32>
    %14 = vector.extract_strided_slice %6 {offsets = [1, 0, 0], sizes = [1, 8, 3], strides = [1, 1, 1]} : vector<9x8x3xbf16> to vector<1x8x3xbf16>
    %15 = vector.shape_cast %14 : vector<1x8x3xbf16> to vector<8x3xbf16>
    %16 = vector.extract_strided_slice %5 {offsets = [0, 1], sizes = [3, 158], strides = [1, 1]} : vector<3x180xbf16> to vector<3x158xbf16>
    %cst_10 = arith.constant dense<0.000000e+00> : vector<8x158xf32>
    %17 = tpu.matmul %15, %16, %cst_10 {dimension_numbers = #tpu.dot_dimension_numbers<[1], [0], [0], [1], [0, 0, 1, 1], [], []>} : vector<8x3xbf16>, vector<3x158xbf16>, vector<8x158xf32> -> vector<8x158xf32>
    %18 = arith.addf %13, %17 : vector<8x158xf32>
    %19 = vector.extract_strided_slice %6 {offsets = [2, 0, 0], sizes = [1, 8, 3], strides = [1, 1, 1]} : vector<9x8x3xbf16> to vector<1x8x3xbf16>
    %20 = vector.shape_cast %19 : vector<1x8x3xbf16> to vector<8x3xbf16>
    %21 = vector.extract_strided_slice %5 {offsets = [0, 2], sizes = [3, 158], strides = [1, 1]} : vector<3x180xbf16> to vector<3x158xbf16>
    %cst_11 = arith.constant dense<0.000000e+00> : vector<8x158xf32>
    %22 = tpu.matmul %20, %21, %cst_11 {dimension_numbers = #tpu.dot_dimension_numbers<[1], [0], [0], [1], [0, 0, 1, 1], [], []>} : vector<8x3xbf16>, vector<3x158xbf16>, vector<8x158xf32> -> vector<8x158xf32>
    %23 = arith.addf %18, %22 : vector<8x158xf32>
    %24 = vector.extract_strided_slice %6 {offsets = [3, 0, 0], sizes = [1, 8, 3], strides = [1, 1, 1]} : vector<9x8x3xbf16> to vector<1x8x3xbf16>
    %25 = vector.shape_cast %24 : vector<1x8x3xbf16> to vector<8x3xbf16>
    %26 = vector.extract_strided_slice %5 {offsets = [0, 10], sizes = [3, 158], strides = [1, 1]} : vector<3x180xbf16> to vector<3x158xbf16>
    %cst_12 = arith.constant dense<0.000000e+00> : vector<8x158xf32>
    %27 = tpu.matmul %25, %26, %cst_12 {dimension_numbers = #tpu.dot_dimension_numbers<[1], [0], [0], [1], [0, 0, 1, 1], [], []>} : vector<8x3xbf16>, vector<3x158xbf16>, vector<8x158xf32> -> vector<8x158xf32>
    %28 = arith.addf %23, %27 : vector<8x158xf32>
    %29 = vector.extract_strided_slice %6 {offsets = [4, 0, 0], sizes = [1, 8, 3], strides = [1, 1, 1]} : vector<9x8x3xbf16> to vector<1x8x3xbf16>
    %30 = vector.shape_cast %29 : vector<1x8x3xbf16> to vector<8x3xbf16>
    %31 = vector.extract_strided_slice %5 {offsets = [0, 11], sizes = [3, 158], strides = [1, 1]} : vector<3x180xbf16> to vector<3x158xbf16>
    %cst_13 = arith.constant dense<0.000000e+00> : vector<8x158xf32>
    %32 = tpu.matmul %30, %31, %cst_13 {dimension_numbers = #tpu.dot_dimension_numbers<[1], [0], [0], [1], [0, 0, 1, 1], [], []>} : vector<8x3xbf16>, vector<3x158xbf16>, vector<8x158xf32> -> vector<8x158xf32>
    %33 = arith.addf %28, %32 : vector<8x158xf32>
    %34 = vector.extract_strided_slice %6 {offsets = [5, 0, 0], sizes = [1, 8, 3], strides = [1, 1, 1]} : vector<9x8x3xbf16> to vector<1x8x3xbf16>
    %35 = vector.shape_cast %34 : vector<1x8x3xbf16> to vector<8x3xbf16>
    %36 = vector.extract_strided_slice %5 {offsets = [0, 12], sizes = [3, 158], strides = [1, 1]} : vector<3x180xbf16> to vector<3x158xbf16>
    %cst_14 = arith.constant dense<0.000000e+00> : vector<8x158xf32>
    %37 = tpu.matmul %35, %36, %cst_14 {dimension_numbers = #tpu.dot_dimension_numbers<[1], [0], [0], [1], [0, 0, 1, 1], [], []>} : vector<8x3xbf16>, vector<3x158xbf16>, vector<8x158xf32> -> vector<8x158xf32>
    %38 = arith.addf %33, %37 : vector<8x158xf32>
    %39 = vector.extract_strided_slice %6 {offsets = [6, 0, 0], sizes = [1, 8, 3], strides = [1, 1, 1]} : vector<9x8x3xbf16> to vector<1x8x3xbf16>
    %40 = vector.shape_cast %39 : vector<1x8x3xbf16> to vector<8x3xbf16>
    %41 = vector.extract_strided_slice %5 {offsets = [0, 20], sizes = [3, 158], strides = [1, 1]} : vector<3x180xbf16> to vector<3x158xbf16>
    %cst_15 = arith.constant dense<0.000000e+00> : vector<8x158xf32>
    %42 = tpu.matmul %40, %41, %cst_15 {dimension_numbers = #tpu.dot_dimension_numbers<[1], [0], [0], [1], [0, 0, 1, 1], [], []>} : vector<8x3xbf16>, vector<3x158xbf16>, vector<8x158xf32> -> vector<8x158xf32>
    %43 = arith.addf %38, %42 : vector<8x158xf32>
    %44 = vector.extract_strided_slice %6 {offsets = [7, 0, 0], sizes = [1, 8, 3], strides = [1, 1, 1]} : vector<9x8x3xbf16> to vector<1x8x3xbf16>
    %45 = vector.shape_cast %44 : vector<1x8x3xbf16> to vector<8x3xbf16>
    %46 = vector.extract_strided_slice %5 {offsets = [0, 21], sizes = [3, 158], strides = [1, 1]} : vector<3x180xbf16> to vector<3x158xbf16>
    %cst_16 = arith.constant dense<0.000000e+00> : vector<8x158xf32>
    %47 = tpu.matmul %45, %46, %cst_16 {dimension_numbers = #tpu.dot_dimension_numbers<[1], [0], [0], [1], [0, 0, 1, 1], [], []>} : vector<8x3xbf16>, vector<3x158xbf16>, vector<8x158xf32> -> vector<8x158xf32>
    %48 = arith.addf %43, %47 : vector<8x158xf32>
    %49 = vector.extract_strided_slice %6 {offsets = [8, 0, 0], sizes = [1, 8, 3], strides = [1, 1, 1]} : vector<9x8x3xbf16> to vector<1x8x3xbf16>
    %50 = vector.shape_cast %49 : vector<1x8x3xbf16> to vector<8x3xbf16>
    %51 = vector.extract_strided_slice %5 {offsets = [0, 22], sizes = [3, 158], strides = [1, 1]} : vector<3x180xbf16> to vector<3x158xbf16>
    %cst_17 = arith.constant dense<0.000000e+00> : vector<8x158xf32>
    %52 = tpu.matmul %50, %51, %cst_17 {dimension_numbers = #tpu.dot_dimension_numbers<[1], [0], [0], [1], [0, 0, 1, 1], [], []>} : vector<8x3xbf16>, vector<3x158xbf16>, vector<8x158xf32> -> vector<8x158xf32>
    %53 = arith.addf %48, %52 : vector<8x158xf32>
    %c0_18 = arith.constant 0 : index
    %c0_19 = arith.constant 0 : index
    %54 = vector.load %arg4[%c0_18, %c0_19] : memref<8x1xf32, #tpu.memory_space<vmem>>, vector<8x1xf32>
    %55 = vector.broadcast %54 : vector<8x1xf32> to vector<8x158xf32>
    %56 = arith.addf %53, %55 : vector<8x158xf32>
    %cst_20 = arith.constant 0.000000e+00 : f32
    %57 = vector.broadcast %cst_20 : f32 to vector<8x158xf32>
    %58 = arith.maximumf %56, %57 : vector<8x158xf32>
    %59 = vector.extract_strided_slice %58 {offsets = [0, 0], sizes = [8, 38], strides = [1, 1]} : vector<8x158xf32> to vector<8x38xf32>
    %60 = vector.broadcast %7 : vector<1x38xf32> to vector<8x38xf32>
    %61 = arith.mulf %59, %60 : vector<8x38xf32>
    %62 = vector.extract_strided_slice %58 {offsets = [0, 60], sizes = [8, 38], strides = [1, 1]} : vector<8x158xf32> to vector<8x38xf32>
    %63 = vector.broadcast %7 : vector<1x38xf32> to vector<8x38xf32>
    %64 = arith.mulf %62, %63 : vector<8x38xf32>
    %65 = vector.extract_strided_slice %58 {offsets = [0, 120], sizes = [8, 38], strides = [1, 1]} : vector<8x158xf32> to vector<8x38xf32>
    %66 = vector.broadcast %7 : vector<1x38xf32> to vector<8x38xf32>
    %67 = arith.mulf %65, %66 : vector<8x38xf32>
    %68 = arith.subf %61, %64 : vector<8x38xf32>
    %c0_21 = arith.constant 0 : index
    %c0_22 = arith.constant 0 : index
    %69 = vector.load %arg10[%c0_21, %c0_22] : memref<1x1xf32, #tpu.memory_space<vmem>>, vector<1x1xf32>
    %70 = arith.mulf %68, %68 : vector<8x38xf32>
    %71 = vector.shape_cast %70 : vector<8x38xf32> to vector<1x8x38xf32>
    %cst_23 = arith.constant dense<0.000000e+00> : vector<1xf32>
    %72 = vector.multi_reduction <add>, %71, %cst_23 [1, 2] : vector<1x8x38xf32> to vector<1xf32>
    %73 = vector.shape_cast %72 : vector<1xf32> to vector<1x1x1xf32>
    %74 = vector.extract %73[0, 0, 0] : f32 from vector<1x1x1xf32>
    %75 = vector.broadcast %74 : f32 to vector<1x1xf32>
    %76 = arith.addf %69, %75 : vector<1x1xf32>
    %c0_24 = arith.constant 0 : index
    %c0_25 = arith.constant 0 : index
    %77 = vector.load %arg10[%c0_24, %c0_25] : memref<1x1xf32, #tpu.memory_space<vmem>>, vector<1x1xf32>
    tpu.vector_store %arg10[%c0_24, %c0_25], %76 {strides = array<i32>} : memref<1x1xf32, #tpu.memory_space<vmem>>, vector<1x1xf32>,
    %78 = arith.truncf %61 : vector<8x38xf32> to vector<8x38xbf16>
    %79 = arith.truncf %67 : vector<8x38xf32> to vector<8x38xbf16>
    %c0_26 = arith.constant 0 : index
    %c0_27 = arith.constant 0 : index
    %80 = vector.load %arg8[%c0_26, %c0_27] : memref<8x8xf32, #tpu.memory_space<vmem>>, vector<8x8xf32>
    %cst_28 = arith.constant dense<0.000000e+00> : vector<8x8xf32>
    %81 = tpu.matmul %78, %78, %cst_28 {dimension_numbers = #tpu.dot_dimension_numbers<[1], [1], [0], [0], [0, 0, 1, 0], [], []>} : vector<8x38xbf16>, vector<8x38xbf16>, vector<8x8xf32> -> vector<8x8xf32>
    %82 = arith.addf %80, %81 : vector<8x8xf32>
    %c0_29 = arith.constant 0 : index
    %c0_30 = arith.constant 0 : index
    %83 = vector.load %arg8[%c0_29, %c0_30] : memref<8x8xf32, #tpu.memory_space<vmem>>, vector<8x8xf32>
    tpu.vector_store %arg8[%c0_29, %c0_30], %82 {strides = array<i32>} : memref<8x8xf32, #tpu.memory_space<vmem>>, vector<8x8xf32>,
    %c0_31 = arith.constant 0 : index
    %c0_32 = arith.constant 0 : index
    %84 = vector.load %arg9[%c0_31, %c0_32] : memref<8x8xf32, #tpu.memory_space<vmem>>, vector<8x8xf32>
    %cst_33 = arith.constant dense<0.000000e+00> : vector<8x8xf32>
    %85 = tpu.matmul %79, %79, %cst_33 {dimension_numbers = #tpu.dot_dimension_numbers<[1], [1], [0], [0], [0, 0, 1, 0], [], []>} : vector<8x38xbf16>, vector<8x38xbf16>, vector<8x8xf32> -> vector<8x8xf32>
    %86 = arith.addf %84, %85 : vector<8x8xf32>
    %c0_34 = arith.constant 0 : index
    %c0_35 = arith.constant 0 : index
    %87 = vector.load %arg9[%c0_34, %c0_35] : memref<8x8xf32, #tpu.memory_space<vmem>>, vector<8x8xf32>
    tpu.vector_store %arg9[%c0_34, %c0_35], %86 {strides = array<i32>} : memref<8x8xf32, #tpu.memory_space<vmem>>, vector<8x8xf32>,
    %88 = vector.extract_strided_slice %4 {offsets = [0, 0], sizes = [3, 60], strides = [1, 1]} : vector<3x180xf32> to vector<3x60xf32>
    %89 = vector.extract_strided_slice %88 {offsets = [0, 1], sizes = [3, 59], strides = [1, 1]} : vector<3x60xf32> to vector<3x59xf32>
    %90 = vector.extract_strided_slice %88 {offsets = [0, 0], sizes = [3, 59], strides = [1, 1]} : vector<3x60xf32> to vector<3x59xf32>
    %91 = arith.subf %89, %90 : vector<3x59xf32>
    %92 = vector.extract_strided_slice %88 {offsets = [0, 10], sizes = [3, 50], strides = [1, 1]} : vector<3x60xf32> to vector<3x50xf32>
    %93 = vector.extract_strided_slice %88 {offsets = [0, 0], sizes = [3, 50], strides = [1, 1]} : vector<3x60xf32> to vector<3x50xf32>
    %94 = arith.subf %92, %93 : vector<3x50xf32>
    %c0_36 = arith.constant 0 : index
    %c0_37 = arith.constant 0 : index
    %c0_38 = arith.constant 0 : index
    %95 = vector.load %arg6[%c0_36, %c0_37, %c0_38] : memref<3x3x60xf32, #tpu.memory_space<vmem>>, vector<3x3x60xf32>
    %96 = vector.extract_strided_slice %95 {offsets = [0, 0, 0], sizes = [1, 3, 59], strides = [1, 1, 1]} : vector<3x3x60xf32> to vector<1x3x59xf32>
    %97 = vector.shape_cast %96 : vector<1x3x59xf32> to vector<3x59xf32>
    %98 = arith.mulf %97, %91 : vector<3x59xf32>
    %99 = arith.mulf %98, %91 : vector<3x59xf32>
    %100 = vector.shape_cast %99 : vector<3x59xf32> to vector<1x3x59xf32>
    %cst_39 = arith.constant dense<0.000000e+00> : vector<1xf32>
    %101 = vector.multi_reduction <add>, %100, %cst_39 [1, 2] : vector<1x3x59xf32> to vector<1xf32>
    %102 = vector.shape_cast %101 : vector<1xf32> to vector<1x1x1xf32>
    %103 = vector.extract %102[0, 0, 0] : f32 from vector<1x1x1xf32>
    %104 = vector.broadcast %103 : f32 to vector<1x1xf32>
    %105 = vector.extract_strided_slice %95 {offsets = [1, 0, 0], sizes = [1, 3, 50], strides = [1, 1, 1]} : vector<3x3x60xf32> to vector<1x3x50xf32>
    %106 = vector.shape_cast %105 : vector<1x3x50xf32> to vector<3x50xf32>
    %107 = arith.mulf %106, %94 : vector<3x50xf32>
    %108 = arith.mulf %107, %94 : vector<3x50xf32>
    %109 = vector.shape_cast %108 : vector<3x50xf32> to vector<1x3x50xf32>
    %cst_40 = arith.constant dense<0.000000e+00> : vector<1xf32>
    %110 = vector.multi_reduction <add>, %109, %cst_40 [1, 2] : vector<1x3x50xf32> to vector<1xf32>
    %111 = vector.shape_cast %110 : vector<1xf32> to vector<1x1x1xf32>
    %112 = vector.extract %111[0, 0, 0] : f32 from vector<1x1x1xf32>
    %113 = vector.broadcast %112 : f32 to vector<1x1xf32>
    %114 = arith.addf %104, %113 : vector<1x1xf32>
    %c0_i32_41 = arith.constant 0 : i32
    %115 = arith.cmpi sgt, %arg1, %c0_i32_41 : i32
    %116 = vector.extract_strided_slice %95 {offsets = [2, 0, 0], sizes = [1, 3, 50], strides = [1, 1, 1]} : vector<3x3x60xf32> to vector<1x3x50xf32>
    %117 = vector.shape_cast %116 : vector<1x3x50xf32> to vector<3x50xf32>
    %118 = arith.mulf %117, %94 : vector<3x50xf32>
    %119 = arith.mulf %118, %94 : vector<3x50xf32>
    %120 = vector.shape_cast %119 : vector<3x50xf32> to vector<1x3x50xf32>
    %cst_42 = arith.constant dense<0.000000e+00> : vector<1xf32>
    %121 = vector.multi_reduction <add>, %120, %cst_42 [1, 2] : vector<1x3x50xf32> to vector<1xf32>
    %122 = vector.shape_cast %121 : vector<1xf32> to vector<1x1x1xf32>
    %123 = vector.extract %122[0, 0, 0] : f32 from vector<1x1x1xf32>
    %124 = vector.broadcast %123 : f32 to vector<1x1xf32>
    %cst_43 = arith.constant 0.000000e+00 : f32
    %125 = vector.broadcast %cst_43 : f32 to vector<1x1xf32>
    %126 = arith.select %115, %124, %125 : vector<1x1xf32>
    %127 = arith.addf %114, %126 : vector<1x1xf32>
    %c0_44 = arith.constant 0 : index
    %c0_45 = arith.constant 0 : index
    %128 = vector.load %arg11[%c0_44, %c0_45] : memref<1x1xf32, #tpu.memory_space<vmem>>, vector<1x1xf32>
    %129 = arith.addf %128, %127 : vector<1x1xf32>
    %c0_46 = arith.constant 0 : index
    %c0_47 = arith.constant 0 : index
    %130 = vector.load %arg11[%c0_46, %c0_47] : memref<1x1xf32, #tpu.memory_space<vmem>>, vector<1x1xf32>
    tpu.vector_store %arg11[%c0_46, %c0_47], %129 {strides = array<i32>} : memref<1x1xf32, #tpu.memory_space<vmem>>, vector<1x1xf32>,
    %c1_i32 = arith.constant 1 : i32
    %131 = arith.cmpi eq, %arg1, %c1_i32 : i32
    %132 = arith.extui %131 : i1 to i32
    %c0_i32_48 = arith.constant 0 : i32
    %133 = arith.cmpi ne, %132, %c0_i32_48 : i32
    scf.if %133 {
      %c0_49 = arith.constant 0 : index
      %c0_50 = arith.constant 0 : index
      %134 = vector.load %arg8[%c0_49, %c0_50] : memref<8x8xf32, #tpu.memory_space<vmem>>, vector<8x8xf32>
      %c0_51 = arith.constant 0 : index
      %c0_52 = arith.constant 0 : index
      %135 = vector.load %arg9[%c0_51, %c0_52] : memref<8x8xf32, #tpu.memory_space<vmem>>, vector<8x8xf32>
      %136 = arith.subf %134, %135 : vector<8x8xf32>
      %cst_53 = arith.constant 0.001953125 : f32
      %137 = vector.broadcast %cst_53 : f32 to vector<8x8xf32>
      %138 = arith.mulf %136, %137 : vector<8x8xf32>
      %139 = arith.mulf %138, %138 : vector<8x8xf32>
      %140 = vector.shape_cast %139 : vector<8x8xf32> to vector<1x8x8xf32>
      %cst_54 = arith.constant dense<0.000000e+00> : vector<1xf32>
      %141 = vector.multi_reduction <add>, %140, %cst_54 [1, 2] : vector<1x8x8xf32> to vector<1xf32>
      %142 = vector.shape_cast %141 : vector<1xf32> to vector<1x1x1xf32>
      %143 = vector.extract %142[0, 0, 0] : f32 from vector<1x1x1xf32>
      %c0_55 = arith.constant 0 : index
      %c0_56 = arith.constant 0 : index
      %144 = vector.load %arg10[%c0_55, %c0_56] : memref<1x1xf32, #tpu.memory_space<vmem>>, vector<1x1xf32>
      %145 = vector.shape_cast %144 : vector<1x1xf32> to vector<1x1x1xf32>
      %cst_57 = arith.constant dense<0.000000e+00> : vector<1xf32>
      %146 = vector.multi_reduction <add>, %145, %cst_57 [1, 2] : vector<1x1x1xf32> to vector<1xf32>
      %147 = vector.shape_cast %146 : vector<1xf32> to vector<1x1x1xf32>
      %148 = vector.extract %147[0, 0, 0] : f32 from vector<1x1x1xf32>
      %c0_58 = arith.constant 0 : index
      %c0_59 = arith.constant 0 : index
      %149 = vector.load %arg11[%c0_58, %c0_59] : memref<1x1xf32, #tpu.memory_space<vmem>>, vector<1x1xf32>
      %150 = vector.shape_cast %149 : vector<1x1xf32> to vector<1x1x1xf32>
      %cst_60 = arith.constant dense<0.000000e+00> : vector<1xf32>
      %151 = vector.multi_reduction <add>, %150, %cst_60 [1, 2] : vector<1x1x1xf32> to vector<1xf32>
      %152 = vector.shape_cast %151 : vector<1xf32> to vector<1x1x1xf32>
      %153 = vector.extract %152[0, 0, 0] : f32 from vector<1x1x1xf32>
      %154 = tpu.iota {dimensions = array<i32: 2>} : vector<1x8x128xi32>
      %c0_i32_61 = arith.constant 0 : i32
      %155 = vector.broadcast %c0_i32_61 : i32 to vector<1x8x128xi32>
      %156 = arith.cmpi eq, %154, %155 : vector<1x8x128xi32>
      %cst_62 = arith.constant 0.000000e+00 : f32
      %157 = vector.broadcast %148 : f32 to vector<1x8x128xf32>
      %158 = vector.broadcast %cst_62 : f32 to vector<1x8x128xf32>
      %159 = arith.select %156, %157, %158 : vector<1x8x128xi1>, vector<1x8x128xf32>
      %c1_i32_63 = arith.constant 1 : i32
      %160 = vector.broadcast %c1_i32_63 : i32 to vector<1x8x128xi32>
      %161 = arith.cmpi eq, %154, %160 : vector<1x8x128xi32>
      %cst_64 = arith.constant 0.000000e+00 : f32
      %162 = vector.broadcast %143 : f32 to vector<1x8x128xf32>
      %163 = vector.broadcast %cst_64 : f32 to vector<1x8x128xf32>
      %164 = arith.select %161, %162, %163 : vector<1x8x128xi1>, vector<1x8x128xf32>
      %165 = arith.addf %159, %164 : vector<1x8x128xf32>
      %c2_i32 = arith.constant 2 : i32
      %166 = vector.broadcast %c2_i32 : i32 to vector<1x8x128xi32>
      %167 = arith.cmpi eq, %154, %166 : vector<1x8x128xi32>
      %cst_65 = arith.constant 0.000000e+00 : f32
      %168 = vector.broadcast %153 : f32 to vector<1x8x128xf32>
      %169 = vector.broadcast %cst_65 : f32 to vector<1x8x128xf32>
      %170 = arith.select %167, %168, %169 : vector<1x8x128xi1>, vector<1x8x128xf32>
      %171 = arith.addf %165, %170 : vector<1x8x128xf32>
      %c0_66 = arith.constant 0 : index
      %c0_67 = arith.constant 0 : index
      %c0_68 = arith.constant 0 : index
      %172 = vector.load %arg7[%c0_66, %c0_67, %c0_68] : memref<1x8x128xf32, #tpu.memory_space<vmem>>, vector<1x8x128xf32>
      tpu.vector_store %arg7[%c0_66, %c0_67, %c0_68], %171 {strides = array<i32>} : memref<1x8x128xf32, #tpu.memory_space<vmem>>, vector<1x8x128xf32>,
    } else {
    }
    return
  }
  func.func @transform_0(%arg0: i32, %arg1: i32) -> (i32, i32, i32, i32) {
    %c0_i32 = arith.constant 0 : i32
    %c0_i32_0 = arith.constant 0 : i32
    %c0_i32_1 = arith.constant 0 : i32
    return %arg0, %arg1, %c0_i32, %c0_i32_0 : i32, i32, i32, i32
  }
  func.func @transform_1(%arg0: i32, %arg1: i32) -> (i32, i32, i32) {
    %c0_i32 = arith.constant 0 : i32
    %c0_i32_0 = arith.constant 0 : i32
    %c0_i32_1 = arith.constant 0 : i32
    %c0_i32_2 = arith.constant 0 : i32
    return %c0_i32, %c0_i32_0, %c0_i32_1 : i32, i32, i32
  }
  func.func @transform_2(%arg0: i32, %arg1: i32) -> (i32, i32) {
    %c0_i32 = arith.constant 0 : i32
    %c0_i32_0 = arith.constant 0 : i32
    %c0_i32_1 = arith.constant 0 : i32
    return %c0_i32, %c0_i32_0 : i32, i32
  }
  func.func @transform_3(%arg0: i32, %arg1: i32) -> (i32, i32) {
    %c0_i32 = arith.constant 0 : i32
    %c0_i32_0 = arith.constant 0 : i32
    %c0_i32_1 = arith.constant 0 : i32
    return %c0_i32, %c0_i32_0 : i32, i32
  }
  func.func @transform_4(%arg0: i32, %arg1: i32) -> (i32, i32, i32) {
    %c0_i32 = arith.constant 0 : i32
    %c0_i32_0 = arith.constant 0 : i32
    %c0_i32_1 = arith.constant 0 : i32
    %c0_i32_2 = arith.constant 0 : i32
    return %c0_i32, %c0_i32_0, %c0_i32_1 : i32, i32, i32
  }
  func.func @transform_5(%arg0: i32, %arg1: i32) -> (i32, i32, i32) {
    %c0_i32 = arith.constant 0 : i32
    %c0_i32_0 = arith.constant 0 : i32
    %c0_i32_1 = arith.constant 0 : i32
    return %arg0, %c0_i32, %c0_i32_0 : i32, i32, i32
  }
}

</mosaic_0001>

<bundles_post_ra>
// kernel: forward.1
= control target key start
LH: loop header
LB: loop body
LE: loop exit
PB: predicated region body
PF: predicated region fallthrough
CT: control target
= control target key end

     0   :  { %s1334_s18 = smov 0   ;;  %s1336_s19 = smov 0   ;;  %s1508_s0 = inlined_call_operand.vmem [shape: f32[2,2,3,180], index: 0, kind: input, shape index: {}]   ;;  %s1509_s1 = inlined_call_operand.vmem [shape: bf16[9,8,3], index: 1, kind: input, shape index: {}]   ;;  %s1510_s2 = inlined_call_operand.vmem [shape: f32[8,1], index: 2, kind: input, shape index: {}]   ;;  %s1511_s3 = inlined_call_operand.vmem [shape: f32[1,38], index: 3, kind: input, shape index: {}]   ;;  %s1512_s4 = inlined_call_operand.vmem [shape: f32[3,3,60], index: 4, kind: input, shape index: {}]   ;;  %s1513_s5 = inlined_call_operand.vmem [shape: f32[2,8,128], index: 5, kind: output, shape index: {}]  }
   0x1   :  { %s1338_s20 = smov 0   ;;  %s1340_s21 = smov 0  }
   0x2   :  { %s1342_s22 = smov 0  }
   0x3 LB: > { %s24_s23 = sadd.s32 1, %s1275_s20  ;;  %s27_s24 = sadd.s32 1, %s1279_s21  ;;  %s1283_s22 = sphi %s1342_s22, %s15_s22   ;;  %s1279_s21 = sphi %s1340_s21, %s1517_s21   ;;  %s1275_s20 = sphi %s1338_s20, %s1516_s20   ;;  %s1271_s19 = sphi %s1336_s19, %s1515_s19   ;;  %s1267_s18 = sphi %s1334_s18, %s1514_s18  }
   0x4   : > { %p25_p0 = scmp.ge.s32.totalorder %s24_s23, 2  ;;  %p1133_p1 = scmp.ge.s32.totalorder %s1283_s22, 1 }
   0x5   : > { %p205_p2 = scmp.lt.s32.totalorder %s1283_s22, 5 }
   0x6   : > { %s1519_s23 = smov (%p25_p0, %s24_s23), 0  ;;  %s1521_s24 = smov (!%p25_p0, %s27_s24), %s1279_s21 }
   0x7   : > { %p206_p3 = pnand %p1133_p1, %p205_p2  ;;  %p29_p4 = scmp.ge.s32.totalorder %s1521_s24, 2 }
   0x8   : > { %p236_p5 = scmp.lt.s32.totalorder (!%p206_p3), %s1271_s19, 1  ;;  %p238_p6 = scmp.lt.s32.totalorder (!%p206_p3), %s1267_s18, 1 }
   0x9   : > { %s1523_s24 = smov (%p29_p4, %s1521_s24), 0  ;;  %209 = sbr.rel (%p206_p3) target bundleno = 1060 (0x424), region = 40 }
   0xa   : > { %p1138_p7 = scmp.ne.s32.totalorder (!%p206_p3), %s1267_s18, 0 }
   0xe   : > { %s1525_s19 = smov (!%p236_p5, %s1271_s19), 1 }
   0xf   : > { %s239_s25 = scalar_select %p238_p6, %s1267_s18, 1 }
  0x10   : > { %s1135_s26 = sshll.u32 %s1525_s19, 2  ;;  %s1137_s27 = sshll.u32 %s1525_s19, 3 }
  0x11   : > { %s1134_s28 = sshll.u32 %s239_s25, 1  ;;  %s1371_s6 = scalar_lea.vmem %s1513_s5, %s1137_s27 }
  0x12   : > { %s242_s7 = sadd.s32 %s1135_s26, %s1134_s28  ;;  %253 = sbr.rel (%p1138_p7) target bundleno = 26 (0x1a), region = 44 }
  0x13   : > { %s1136_s8 = sshll.u32 %s242_s7, 2 }
  0x14   : > { %s244_s11 = scalar_lea.vmem %s1508_s0, %s1136_s8 }
  0x17   : > { %vm254_vm0 = vcmask 64512   ;;  %vm257_vm1 = vcmask 0   ;;  %v1285_v0 = vmov 0.0  }
  0x18   : > { %255 = vst.msk [vmem:[#allocation2] sm:$0xff] %vm254_vm0, %v1285_v0  ;;  %256 = vst.msk [vmem:[#allocation3] sm:$0xff] %vm254_vm0, %v1285_v0 }
  0x19   : > { %258 = vst.msk [vmem:[#allocation4] sm:$0x1] %vm257_vm1, %v1285_v0  ;;  %259 = vst.msk [vmem:[#allocation5] sm:$0x1] %vm257_vm1, %v1285_v0 }
  0x1a PF: > { %v1377_v1 = vld [vmem:[%s244_s11] sm:$0x77]  ;;  %vm288_vm2 = vcmask 1040384   ;;  %vm289_vm3 = vcmask 1041408   ;;  %v1286_v4 = vmov 65535   ;;  %s1287_s12 = smov 126  }
  0x1b   : > { %v264_v2 = vpack.c.bf16 %v1377_v1, %v1377_v1  ;;  %v262_v3 = vcombine.high %v1377_v1, %v1377_v1  ;;  %v290_v5 = vsel %vm288_vm2, 4294967295, %v1286_v4  ;;  %s1288_s13 = smov 127   ;;  %v1289_v8 = vmov 0   ;;  %v266_v11 = vld [vmem:[%s1509_s1] sm:$0xf]  ;;  %s1290_s16 = smov 118  }
  0x1c   : > { %v1384_v7 = vsel %vm289_vm3, %v290_v5, 0  ;;  %330 = vmatprep.mubr.bf16.mxu0 %v1289_v8  ;;  %380 = vmatprep.mubr.bf16.mxu1 %v1289_v8  ;;  %vm284_vm4 = vcmask 23552   ;;  %s1291_s17 = smov 117   ;;  %s1292_s19 = smov 116   ;;  %v795_v12 = vld [vmem:[%s1510_s2] sm:$0xff]  ;;  %vm393_vm5 = vcmask 1031168  }
  0x1d   : > { %389 = vrot.lane.b32.xlu1 %v264_v2, %s1287_s12  ;;  %278 = vrot.lane.b32.xlu0 %v264_v2, %s1288_s13  ;;  %v265_v6 = vpack.c.bf16 %v262_v3, %v262_v3  ;;  %v343_v10 = vand.u32 %v1384_v7, %v264_v2  ;;  %s1293_s25 = smov 108   ;;  %s1294_s26 = smov 107   ;;  %v1405_v13 = vld [vmem:[%s1511_s3] ss:$0 sm:$0xff]  ;;  %vm282_vm6 = vcmask 1039360   ;;  %vm451_vm7 = vcmask 965632  }
  0x1e   : > { %1243 = vset.pattern.permute.xlu0 %v1289_v8  ;;  %s1295_s27 = smov 106   ;;  %s1296_s8 = smov 120   ;;  %v267_v24 = vld [vmem:[%s1509_s1 + $0x4] sm:$0xf]  ;;  %vm509_vm8 = vcmask 957440   ;;  %vm567_vm9 = vcmask 949248  }
  0x1f   : > { %v346_v9 = vand.u32 %v1384_v7, %v265_v6  ;;  %s1297_s9 = smov 60   ;;  %v269_v32 = vld [vmem:[%s1509_s1 + $0xc] sm:$0xf]  ;;  %v268_v36 = vld [vmem:[%s1509_s1 + $0x8] sm:$0xf]  ;;  %vm625_vm10 = vcmask 883712  }
  0x20   : > { %v271_v44 = vld [vmem:[%s1509_s1 + $0x14] sm:$0xf]  ;;  %vm683_vm11 = vcmask 875520   ;;  %v270_v48 = vld [vmem:[%s1509_s1 + $0x10] sm:$0xf]  ;;  %vm741_vm12 = vcmask 867328  }
  0x21   : > { %391 = vrot.lane.b32.xlu1 %v265_v6, %s1287_s12  ;;  %280 = vrot.lane.b32.xlu0 %v265_v6, %s1288_s13  ;;  %v273_v56 = vld [vmem:[%s1509_s1 + $0x1c] sm:$0xf]  ;;  %v272_v60 = vld [vmem:[%s1509_s1 + $0x18] sm:$0xf]  ;;  %v1298_v3 = vmov 0.0   ;;  %vm1299_vm13 = vmmov 0  }
  0x22   : > { %362 = vmatprep.subr.bf16.mxu1 %v346_v9  ;;  %v274_v61 = vld [vmem:[%s1509_s1 + $0x20] sm:$0xf]  ;;  %vm828_vm14 = vcmask 310272   ;;  %s1300_s10 = smov 8   ;;  %s1301_s11 = smov 10   ;;  %vm891_vm15 = vcmask 64512  }
  0x23   : > { %363 = vmatpush1.bf16.msra.mxu1 %v343_v10  ;;  %s1302_s12 = smov 1   ;;  %s1303_s14 = smov 68   ;;  %vm982_vm0 = vcmask 403456   ;;  %vm964_vm1 = vcmask 477184   ;;  %vm841_vm2 = vcmask 0  }
  0x24   : > { %p995_p8 = scmp.gt.s32.totalorder %s1267_s18, 0  ;;  %p1151_p9 = scmp.ne.s32.totalorder %s1267_s18, 1 }
  0x25   : > { %449 = vrot.lane.b32.xlu1 %v265_v6, %s1290_s16  ;;  %447 = vrot.lane.b32.xlu0 %v264_v2, %s1290_s16 }
  0x26   : > { %1140 = vmatmul.mubr.msk.bf16.vlgmr.msra.gmra.mxu1 %vm284_vm4, %v266_v11 }
  0x27   : > { %494 = vmatprep.mubr.bf16.mxu1 %v1289_v8 }
  0x29   : > { %507 = vrot.lane.b32.xlu1 %v265_v6, %s1291_s17  ;;  %505 = vrot.lane.b32.xlu0 %v264_v2, %s1291_s17 }
  0x2d   : > { %565 = vrot.lane.b32.xlu1 %v265_v6, %s1292_s19  ;;  %563 = vrot.lane.b32.xlu0 %v264_v2, %s1292_s19 }
  0x31   : > { %623 = vrot.lane.b32.xlu1 %v265_v6, %s1293_s25  ;;  %621 = vrot.lane.b32.xlu0 %v264_v2, %s1293_s25 }
  0x35   : > { %681 = vrot.lane.b32.xlu1 %v265_v6, %s1294_s26  ;;  %679 = vrot.lane.b32.xlu0 %v264_v2, %s1294_s26 }
  0x39   : > { %739 = vrot.lane.b32.xlu1 %v265_v6, %s1295_s27  ;;  %737 = vrot.lane.b32.xlu0 %v264_v2, %s1295_s27  ;;  %s1009_s27 = scalar_select %p995_p8, 1, 0 }
  0x3d   : > { %798 = vperm.xlu0 %1243, %v795_v12   ;;  %816 = vrot.lane.b32.xlu1 %v1405_v13, %s1296_s8 }
  0x41   : > { %812 = vrot.lane.b32.xlu1 %v1405_v13, %s1297_s9 }
  0x8f   : > { %v390_v14 = vpop.permute.xlu1 %389  ;;  %v279_v15 = vpop.permute.xlu0 %278 }
  0x93   : > { %v392_v16 = vpop.permute.xlu1 %391  ;;  %v281_v17 = vpop.permute.xlu0 %280 }
  0x94   : > { %v394_v18 = vsel %vm393_vm5, %v390_v14, %v392_v16  ;;  %v402_v19 = vand.u32 %v392_v16, %v1384_v7  ;;  %v283_v20 = vsel %vm282_vm6, %v279_v15, %v281_v17  ;;  %v296_v21 = vand.u32 %v1384_v7, %v281_v17 }
  0x95   : > { %v293_v22 = vand.u32 %v1384_v7, %v283_v20  ;;  %v399_v23 = vand.u32 %v394_v18, %v1384_v7 }
  0x96   : > { %312 = vmatprep.subr.bf16.mxu0 %v296_v21 }
  0x97   : > { %313 = vmatpush1.bf16.msra.mxu0 %v293_v22  ;;  %v450_v25 = vpop.permute.xlu1 %449  ;;  %v448_v26 = vpop.permute.xlu0 %447 }
  0x98   : > { %418 = vmatprep.subr.bf16.mxu0 %v402_v19  ;;  %v460_v27 = vand.u32 %v450_v25, %v1384_v7  ;;  %v452_v28 = vsel %vm451_vm7, %v448_v26, %v450_v25 }
  0x99   : > { %v457_v29 = vand.u32 %v452_v28, %v1384_v7 }
  0x9a   : > { %1139 = vmatmul.mubr.msk.bf16.vlgmr.msra.gmra.mxu0 %vm284_vm4, %v267_v24  ;;  %476 = vmatprep.subr.bf16.mxu1 %v460_v27 }
  0x9b   : > { %419 = vmatpush1.bf16.msra.mxu0 %v399_v23  ;;  %v508_v30 = vpop.permute.xlu1 %507  ;;  %v506_v31 = vpop.permute.xlu0 %505  ;;  %477 = vmatpush1.bf16.msra.mxu1 %v457_v29 }
  0x9c   : > { %v518_v33 = vand.u32 %v508_v30, %v1384_v7  ;;  %v510_v34 = vsel %vm509_vm8, %v506_v31, %v508_v30  ;;  %436 = vmatprep.mubr.bf16.mxu0 %v1289_v8 }
  0x9d   : > { %v515_v35 = vand.u32 %v510_v34, %v1384_v7 }
  0x9e   : > { %534 = vmatprep.subr.bf16.mxu0 %v518_v33  ;;  %1142 = vmatmul.mubr.msk.bf16.vlgmr.msra.gmra.mxu1 %vm284_vm4, %v269_v32 }
  0x9f   : > { %v566_v37 = vpop.permute.xlu1 %565  ;;  %v564_v38 = vpop.permute.xlu0 %563  ;;  %610 = vmatprep.mubr.bf16.mxu1 %v1289_v8 }
  0xa0   : > { %v576_v39 = vand.u32 %v566_v37, %v1384_v7  ;;  %v568_v40 = vsel %vm567_vm9, %v564_v38, %v566_v37 }
  0xa1   : > { %v573_v41 = vand.u32 %v568_v40, %v1384_v7 }
  0xa2   : > { %1141 = vmatmul.mubr.msk.bf16.vlgmr.msra.gmra.mxu0 %vm284_vm4, %v268_v36  ;;  %592 = vmatprep.subr.bf16.mxu1 %v576_v39 }
  0xa3   : > { %535 = vmatpush1.bf16.msra.mxu0 %v515_v35  ;;  %v624_v42 = vpop.permute.xlu1 %623  ;;  %v622_v43 = vpop.permute.xlu0 %621  ;;  %593 = vmatpush1.bf16.msra.mxu1 %v573_v41 }
  0xa4   : > { %v634_v45 = vand.u32 %v624_v42, %v1384_v7  ;;  %v626_v46 = vsel %vm625_vm10, %v622_v43, %v624_v42  ;;  %552 = vmatprep.mubr.bf16.mxu0 %v1289_v8 }
  0xa5   : > { %v631_v47 = vand.u32 %v626_v46, %v1384_v7 }
  0xa6   : > { %650 = vmatprep.subr.bf16.mxu0 %v634_v45  ;;  %1144 = vmatmul.mubr.msk.bf16.vlgmr.msra.gmra.mxu1 %vm284_vm4, %v271_v44 }
  0xa7   : > { %v682_v49 = vpop.permute.xlu1 %681  ;;  %v680_v50 = vpop.permute.xlu0 %679  ;;  %726 = vmatprep.mubr.bf16.mxu1 %v1289_v8 }
  0xa8   : > { %v692_v51 = vand.u32 %v682_v49, %v1384_v7  ;;  %v684_v52 = vsel %vm683_vm11, %v680_v50, %v682_v49 }
  0xa9   : > { %v689_v53 = vand.u32 %v684_v52, %v1384_v7 }
  0xaa   : > { %1143 = vmatmul.mubr.msk.bf16.vlgmr.msra.gmra.mxu0 %vm284_vm4, %v270_v48  ;;  %708 = vmatprep.subr.bf16.mxu1 %v692_v51 }
  0xab   : > { %651 = vmatpush1.bf16.msra.mxu0 %v631_v47  ;;  %v740_v54 = vpop.permute.xlu1 %739  ;;  %v738_v55 = vpop.permute.xlu0 %737  ;;  %709 = vmatpush1.bf16.msra.mxu1 %v689_v53 }
  0xac   : > { %v750_v57 = vand.u32 %v740_v54, %v1384_v7  ;;  %v742_v58 = vsel %vm741_vm12, %v738_v55, %v740_v54  ;;  %668 = vmatprep.mubr.bf16.mxu0 %v1289_v8  ;;  %1158 = vmatprep.subr.bf16.mxu1 %v1298_v3 }
  0xad   : > { %v747_v59 = vand.u32 %v742_v58, %v1384_v7 }
  0xae   : > { %766 = vmatprep.subr.bf16.mxu0 %v750_v57  ;;  %1146 = vmatmul.mubr.msk.bf16.vlgmr.msra.gmra.mxu1 %vm284_vm4, %v273_v56 }
  0xaf   : > { %1160 = vmatprep.mubr.msk.bf16.mxu1 %vm1299_vm13, %v1298_v3  ;;  %v817_v56 = vpop.permute.xlu1 %816 }
  0xb2   : > { %1145 = vmatmul.mubr.msk.bf16.vlgmr.msra.gmra.mxu0 %vm284_vm4, %v272_v60 }
  0xb3   : > { %767 = vmatpush1.bf16.msra.mxu0 %v747_v59  ;;  %784 = vmatprep.mubr.bf16.mxu0 %v1289_v8 }
  0xb4   : > { %1164 = vmatprep.subr.bf16.mxu0 %v1298_v3 }
  0xb8   : > { %v799_v47 = vpop.permute.xlu0 %798 }
  0xba   : > { %1147 = vmatmul.mubr.msk.bf16.vlgmr.msra.gmra.mxu0 %vm284_vm4, %v274_v61 }
  0xbb   : > { %1166 = vmatprep.mubr.msk.bf16.mxu0 %vm1299_vm13, %v1298_v3  ;;  %v813_v3 = vpop.permute.xlu1 %812 }
  0xe6   : > { %v382_v62 = vpop.f32.mrf.mxu1 }
  0xe8   : > { %v384_v63 = vpop.f32.mrf.mxu1 }
  0xea   : > { %v386_v0 = vpop.f32.mrf.mxu1 }
  0xec   : > { %v387_v2 = vpop.f32.mrf.mxu1 }
 0x15a   : > { %v332_v4 = vpop.f32.mrf.mxu0 }
 0x15b   : > { %v383_v17 = vadd.f32 %v382_v62, %v332_v4 }
 0x15c   : > { %v334_v5 = vpop.f32.mrf.mxu0 }
 0x15d   : > { %v385_v20 = vadd.f32 %v384_v63, %v334_v5 }
 0x15e   : > { %v336_v6 = vpop.f32.mrf.mxu0  ;;  %v496_v7 = vpop.f32.mrf.mxu1 }
 0x160   : > { %v337_v8 = vpop.f32.mrf.mxu0  ;;  %v498_v9 = vpop.f32.mrf.mxu1 }
 0x162   : > { %v438_v10 = vpop.f32.mrf.mxu0  ;;  %v500_v11 = vpop.f32.mrf.mxu1 }
 0x163   : > { %v445_v21 = vadd.f32 %v438_v10, %v383_v17  ;;  %v846_v17 = vld [vmem:[#allocation2] sm:$0xff] }
 0x164   : > { %v440_v12 = vpop.f32.mrf.mxu0  ;;  %v501_v14 = vpop.f32.mrf.mxu1 }
 0x165   : > { %v446_v24 = vadd.f32 %v440_v12, %v385_v20  ;;  %v503_v27 = vadd.f32 %v496_v7, %v445_v21 }
 0x166   : > { %v442_v15 = vpop.f32.mrf.mxu0  ;;  %v612_v16 = vpop.f32.mrf.mxu1 }
 0x167   : > { %v504_v30 = vadd.f32 %v498_v9, %v446_v24  ;;  %v955_v24 = vld [vmem:[%s1512_s4] sm:$0x7] }
 0x168   : > { %v443_v18 = vpop.f32.mrf.mxu0  ;;  %v614_v19 = vpop.f32.mrf.mxu1 }
 0x16a   : > { %v554_v22 = vpop.f32.mrf.mxu0  ;;  %v616_v23 = vpop.f32.mrf.mxu1 }
 0x16b   : > { %v561_v31 = vadd.f32 %v554_v22, %v503_v27  ;;  %v957_v22 = vld [vmem:[%s1512_s4 + $0x8] sm:$0x7] }
 0x16c   : > { %v556_v25 = vpop.f32.mrf.mxu0  ;;  %v617_v26 = vpop.f32.mrf.mxu1 }
 0x16d   : > { %v562_v34 = vadd.f32 %v556_v25, %v504_v30  ;;  %v619_v37 = vadd.f32 %v612_v16, %v561_v31  ;;  %v956_v25 = vld [vmem:[%s1512_s4 + $0x4] sm:$0x7] }
 0x16e   : > { %v558_v28 = vpop.f32.mrf.mxu0  ;;  %v728_v29 = vpop.f32.mrf.mxu1 }
 0x16f   : > { %v620_v40 = vadd.f32 %v614_v19, %v562_v34 }
 0x170   : > { %v559_v32 = vpop.f32.mrf.mxu0  ;;  %v730_v33 = vpop.f32.mrf.mxu1 }
 0x172   : > { %v670_v35 = vpop.f32.mrf.mxu0  ;;  %v732_v36 = vpop.f32.mrf.mxu1 }
 0x173   : > { %v677_v41 = vadd.f32 %v670_v35, %v619_v37 }
 0x174   : > { %v672_v38 = vpop.f32.mrf.mxu0  ;;  %v733_v39 = vpop.f32.mrf.mxu1 }
 0x175   : > { %v678_v43 = vadd.f32 %v672_v38, %v620_v40  ;;  %v735_v45 = vadd.f32 %v728_v29, %v677_v41 }
 0x176   : > { %v674_v42 = vpop.f32.mrf.mxu0 }
 0x177   : > { %v736_v48 = vadd.f32 %v730_v33, %v678_v43  ;;  %v893_v43 = vld [vmem:[#allocation3] sm:$0xff] }
 0x178   : > { %v675_v44 = vpop.f32.mrf.mxu0 }
 0x17a   : > { %v786_v46 = vpop.f32.mrf.mxu0 }
 0x17b   : > { %v793_v49 = vadd.f32 %v786_v46, %v735_v45 }
 0x17c   : > { %v788_v50 = vpop.f32.mrf.mxu0 }
 0x17d   : > { %v794_v51 = vadd.f32 %v788_v50, %v736_v48  ;;  %v801_v52 = vadd.f32 %v799_v47, %v793_v49  ;;  %v826_v49 = vld [vmem:[#allocation4] sm:$0x1] }
 0x17e   : > { %v790_v53 = vpop.f32.mrf.mxu0 }
 0x17f   : > { %v802_v54 = vadd.f32 %v799_v47, %v794_v51  ;;  %v803_v55 = vmax.f32 %v801_v52, 0.0 }
 0x180   : > { %v791_v57 = vpop.f32.mrf.mxu0 }
 0x181   : > { %v804_v58 = vmax.f32 %v802_v54, 0.0  ;;  %v811_v59 = vmul.f32 %v1405_v13, %v803_v55  ;;  %v819_v60 = vmul.f32 %v817_v56, %v803_v55  ;;  %v815_v13 = vmul.f32 %v813_v3, %v803_v55 }
 0x183   : > { %v820_v61 = vmul.f32 %v817_v56, %v804_v58  ;;  %v844_v62 = vpack.c.bf16 %v819_v60, %v819_v60  ;;  %v843_v63 = vpack.c.bf16 %v811_v59, %v811_v59 }
 0x185   : > { %896 = vrot.lane.b32.xlu1 %v844_v62, %s1300_s10  ;;  %v848_v0 = vsel %vm828_vm14, %v843_v63, 0  ;;  %v845_v2 = vpack.c.bf16 %v820_v61, %v820_v61 }
 0x186   : > { %1159 = vmatpush3.bf16.xpose.msra.mxu1 %v848_v0 }
 0x187   : > { %898 = vrot.lane.b32.xlu0 %v845_v2, %s1300_s10 }
 0x189   : > { %951 = vrot.lane.b32.xlu1 %v1377_v1, %s1301_s11 }
 0x18b   : > { %947 = vrot.lane.b32.xlu0 %v1377_v1, %s1302_s12 }
 0x18d   : > { %1161 = vmatmul.mubr.msk.bf16.vlgmr.msra.gmra.mxu1 %vm828_vm14, %v843_v63 }
 0x18f   : > { %822 = vrot.lane.b32.xlu0 %v815_v13, %s1303_s14 }
 0x1f7   : > { %v897_v4 = vpop.permute.xlu1 %896 }
 0x1f9   : > { %v899_v5 = vpop.permute.xlu0 %898 }
 0x1fa   : > { %v901_v6 = vsel %vm891_vm15, %v897_v4, %v899_v5 }
 0x1fb   : > { %v903_v7 = vsel %vm828_vm14, %v901_v6, 0  ;;  %v952_v8 = vpop.permute.xlu1 %951 }
 0x1fc   : > { %v954_v9 = vsub.f32 %v1377_v1, %v952_v8  ;;  %1165 = vmatpush3.bf16.xpose.msra.mxu0 %v903_v7 }
 0x1fd   : > { %v948_v10 = vpop.permute.xlu0 %947 }
 0x1fe   : > { %v950_v11 = vsub.f32 %v1377_v1, %v948_v10  ;;  %977 = vrot.lane.b32.xlu0 %v954_v9, %s1290_s16  ;;  %v1010_v9 = vstv %s1009_s27 }
 0x1ff   : > { %vm1011_vm3 = vcmp.eq.s32.totalorder %v1010_v9, 1 }
 0x200   : > { %959 = vrot.lane.b32.xlu1 %v950_v11, %s1288_s13 }
 0x201   : > { %v823_v12 = vpop.permute.xlu0 %822 }
 0x202   : > { %v825_v14 = vsub.f32 %v811_v59, %v823_v12 }
 0x203   : > { %1167 = vmatmul.mubr.msk.bf16.vlgmr.msra.gmra.mxu0 %vm828_vm14, %v901_v6 }
 0x204   : > { %v827_v15 = vmul.f32 %v825_v14, %v825_v14 }
 0x206   : > { %v829_v16 = vsel %vm828_vm14, %v827_v15, 0.0 }
 0x224   : > { %830 = vadd.xlane.f32.xlu1 %v829_v16  ;;  %v1014_v16 = vld [vmem:[#allocation5] sm:$0x1] }
 0x24d   : > { %v884_v18 = vpop.f32.mrf.mxu1 }
 0x24e   : > { %v890_v19 = vadd.f32 %v884_v18, %v846_v17 }
 0x24f   : > { %v1162_v20 = vpop.f32.mrf.mxu1 }
 0x250   : > { %892 = vst.msk [vmem:[#allocation2] sm:$0xff] %vm891_vm15, %v890_v19 }
 0x251   : > { %v887_v21 = vpop.f32.mrf.mxu1 }
 0x253   : > { %v1163_v1 = vpop.f32.mrf.mxu1 }
 0x270   : > { %v978_v23 = vpop.permute.xlu0 %977 }
 0x271   : > { %v996_v26 = vmul.f32 %v978_v23, %v957_v22  ;;  %v980_v30 = vmul.f32 %v978_v23, %v956_v25 }
 0x272   : > { %v960_v27 = vpop.permute.xlu1 %959 }
 0x273   : > { %v962_v28 = vmul.f32 %v960_v27, %v955_v24  ;;  %v997_v29 = vmul.f32 %v996_v26, %v978_v23  ;;  %v981_v34 = vmul.f32 %v980_v30, %v978_v23 }
 0x275   : > { %v963_v31 = vmul.f32 %v962_v28, %v960_v27  ;;  %v998_v32 = vsel %vm982_vm0, %v997_v29, 0.0  ;;  %v983_v35 = vsel %vm982_vm0, %v981_v34, 0.0 }
 0x276   : > { %999 = vadd.xlane.f32.xlu1 %v998_v32 }
 0x277   : > { %v965_v33 = vsel %vm964_vm1, %v963_v31, 0.0 }
 0x278   : > { %966 = vadd.xlane.f32.xlu0 %v965_v33 }
 0x27c   : > { %984 = vadd.xlane.f32.xlu0 %v983_v35 }
 0x2ad   : > { %v831_v36 = vpop.xlane.xlu1 %830 }
 0x2ae   : > { %v832_v37 = vrot.slane %v831_v36, 4 }
 0x2b0   : > { %v833_v38 = vadd.f32 %v832_v37, %v831_v36 }
 0x2b2   : > { %v834_v39 = vrot.slane %v833_v38, 2 }
 0x2b4   : > { %v835_v40 = vadd.f32 %v834_v39, %v833_v38 }
 0x2b6   : > { %v836_v41 = vrot.slane %v835_v40, 1 }
 0x2b8   : > { %v837_v42 = vadd.f32 %v836_v41, %v835_v40 }
 0x2ba   : > { %1170 = vpush %v837_v42 }
 0x2c3   : > { %v939_v44 = vpop.f32.mrf.mxu0 }
 0x2c4   : > { %v945_v45 = vadd.f32 %v939_v44, %v893_v43 }
 0x2c5   : > { %v1168_v46 = vpop.f32.mrf.mxu0 }
 0x2c6   : > { %946 = vst.msk [vmem:[#allocation3] sm:$0xff] %vm891_vm15, %v945_v45 }
 0x2c7   : > { %v942_v47 = vpop.f32.mrf.mxu0 }
 0x2c9   : > { %v1169_v48 = vpop.f32.mrf.mxu0 }
 0x2eb   : > { %s1171_s26 = spop %1170 }
 0x2ec   : > { %v839_v50 = vstv %s1171_s26 }
 0x2ed   : > { %v840_v51 = vadd.f32 %v839_v50, %v826_v49 }
 0x2ef   : > { %842 = vst.msk [vmem:[#allocation4] sm:$0x1] %vm841_vm2, %v840_v51 }
 0x2ff   : > { %v1000_v52 = vpop.xlane.xlu1 %999 }
 0x300   : > { %v1001_v53 = vrot.slane %v1000_v52, 4 }
 0x301   : > { %v967_v54 = vpop.xlane.xlu0 %966 }
 0x302   : > { %v1002_v55 = vadd.f32 %v1001_v53, %v1000_v52  ;;  %v968_v56 = vrot.slane %v967_v54, 4 }
 0x304   : > { %v969_v57 = vadd.f32 %v968_v56, %v967_v54  ;;  %v1003_v58 = vrot.slane %v1002_v55, 2 }
 0x305   : > { %v985_v59 = vpop.xlane.xlu0 %984 }
 0x306   : > { %v970_v60 = vrot.slane %v969_v57, 2  ;;  %v986_v61 = vrot.slane %v985_v59, 4  ;;  %v1004_v0 = vadd.f32 %v1003_v58, %v1002_v55 }
 0x308   : > { %v987_v62 = vadd.f32 %v986_v61, %v985_v59  ;;  %v971_v63 = vadd.f32 %v970_v60, %v969_v57  ;;  %v1005_v5 = vrot.slane %v1004_v0, 1 }
 0x30a   : > { %v988_v2 = vrot.slane %v987_v62, 2  ;;  %v972_v3 = vrot.slane %v971_v63, 1  ;;  %v1006_v8 = vadd.f32 %v1005_v5, %v1004_v0 }
 0x30c   : > { %v989_v13 = vadd.f32 %v988_v2, %v987_v62  ;;  %v973_v4 = vadd.f32 %v972_v3, %v971_v63 }
 0x30e   : > { %1172 = vpush %v973_v4  ;;  %v990_v6 = vrot.slane %v989_v13, 1 }
 0x310   : > { %v991_v7 = vadd.f32 %v990_v6, %v989_v13 }
 0x312   : > { %1174 = vpush %v991_v7 }
 0x313   : > { %1176 = vpush %v1006_v8 }
 0x33f   : > { %s1173_s28 = spop %1172 }
 0x340   : > { %v975_v10 = vstv %s1173_s28 }
 0x343   : > { %s1175_s29 = spop %1174 }
 0x344   : > { %v993_v11 = vstv %s1175_s29  ;;  %s1177_s30 = spop %1176 }
 0x345   : > { %v994_v12 = vadd.f32 %v993_v11, %v975_v10  ;;  %v1008_v14 = vstv %s1177_s30 }
 0x346   : > { %v1012_v15 = vsel %vm1011_vm3, %v1008_v14, 0.0 }
 0x347   : > { %v1013_v17 = vadd.f32 %v1012_v15, %v994_v12  ;;  %1020 = sbr.rel (%p1151_p9) target bundleno = 1060 (0x424), region = 48 }
 0x349   : > { %v1015_v18 = vadd.f32 %v1014_v16, %v1013_v17 }
 0x34b   : > { %1016 = vst.msk [vmem:[#allocation5] sm:$0x1] %vm841_vm2, %v1015_v18 }
 0x34c   : > { %v1021_v19 = vld [vmem:[#allocation2] sm:$0xff]  ;;  %v1022_v20 = vld [vmem:[#allocation3] sm:$0xff]  ;;  %v1036_v31 = vld [vmem:[#allocation4] sm:$0x1]  ;;  %v1042_v33 = vlaneseq }
 0x34d   : > { %v1023_v21 = vsub.f32 %v1021_v19, %v1022_v20 }
 0x34e   : > { %v1043_v34 = vand.u32 127, %v1042_v33 }
 0x34f   : > { %v1024_v1 = vmul.f32 0.001953125, %v1023_v21 }
 0x350   : > { %vm1047_vm4 = vcmp.eq.s32.totalorder %v1043_v34, 1  ;;  %vm1044_vm5 = vcmp.eq.s32.totalorder %v1043_v34, 0  ;;  %vm1051_vm6 = vcmp.eq.s32.totalorder %v1043_v34, 2 }
 0x351   : > { %v1025_v22 = vmul.f32 %v1024_v1, %v1024_v1 }
 0x352   : > { %v1039_v32 = vld [vmem:[#allocation5] sm:$0x1] }
 0x353   : > { %v1026_v23 = vsel %vm891_vm15, %v1025_v22, 0.0 }
 0x354   : > { %1027 = vadd.xlane.f32.xlu0 %v1026_v23 }
 0x3dd   : > { %v1028_v24 = vpop.xlane.xlu0 %1027 }
 0x3de   : > { %v1029_v25 = vrot.slane %v1028_v24, 4 }
 0x3e0   : > { %v1030_v26 = vadd.f32 %v1029_v25, %v1028_v24 }
 0x3e2   : > { %v1031_v27 = vrot.slane %v1030_v26, 2 }
 0x3e4   : > { %v1032_v28 = vadd.f32 %v1031_v27, %v1030_v26 }
 0x3e6   : > { %v1033_v29 = vrot.slane %v1032_v28, 1 }
 0x3e8   : > { %v1034_v30 = vadd.f32 %v1033_v29, %v1032_v28 }
 0x3ea   : > { %1178 = vpush %v1034_v30 }
 0x3eb   : > { %1180 = vpush %v1036_v31 }
 0x3ec   : > { %1182 = vpush %v1039_v32 }
 0x41b   : > { %s1179_s18 = spop %1178 }
 0x41c   : > { %v1048_v35 = vstv %s1179_s18  ;;  %s1181_s7 = spop %1180 }
 0x41d   : > { %v1049_v36 = vsel %vm1047_vm4, %v1048_v35, 0.0  ;;  %v1045_v37 = vstv %s1181_s7  ;;  %s1183_s8 = spop %1182 }
 0x41e   : > { %v1046_v38 = vsel %vm1044_vm5, %v1045_v37, 0.0  ;;  %v1052_v39 = vstv %s1183_s8 }
 0x41f   : > { %v1050_v40 = vadd.f32 %v1049_v36, %v1046_v38  ;;  %v1053_v41 = vsel %vm1051_vm6, %v1052_v39, 0.0 }
 0x421   : > { %v1054_v42 = vadd.f32 %v1053_v41, %v1050_v40 }
 0x423   : > { %1055 = vst [vmem:[%s1371_s6] sm:$0xff] %v1054_v42 }
 0x424 PF: > { %s15_s22 = sadd.s32 1, %s1283_s22   ;;  %s1514_s18 = smov %s1275_s20 }
 0x425   : > { %p12_p10 = scmp.ge.s32.totalorder %s15_s22, 6   ;;  %s1515_s19 = smov %s1279_s21 }
 0x426   : > { %s1516_s20 = smov %s1519_s23  ;;  %s1517_s21 = smov %s1523_s24 }
 0x427   :  { %14 = sbr.rel (!%p12_p10) target bundleno = 3 (0x3), region = 78 }

</bundles_post_ra>
